<compile_context>
chip_gen: v7x
topology: tpu7x:2x2x1
jax: 0.10.0
libtpu: 0.0.40
codegen_flags: <defaults>
</compile_context>

<pallas_src>
import functools

import jax
import jax.numpy as jnp
from jax.experimental import pallas as pl
from jax.experimental.pallas import tpu as pltpu

_HIGHEST = jax.lax.Precision.HIGHEST


def _autoencoder_kernel(x_ref,
                        w1_ref, b1_ref,
                        w2_ref, b2_ref,
                        w3_ref, b3_ref,
                        w4_ref, b4_ref,
                        enc_ref, dec_ref):
    x = x_ref[...]

    # Encoder: Linear -> ReLU -> Linear -> ReLU
    h1 = jnp.dot(x, w1_ref[...], preferred_element_type=jnp.float32,
                 precision=_HIGHEST) + b1_ref[...]
    h1 = jnp.maximum(h1, 0.0)
    enc = jnp.dot(h1, w2_ref[...], preferred_element_type=jnp.float32,
                  precision=_HIGHEST) + b2_ref[...]
    enc = jnp.maximum(enc, 0.0)
    enc_ref[...] = enc.astype(enc_ref.dtype)

    # Decoder: Linear -> ReLU -> Linear -> Sigmoid
    h2 = jnp.dot(enc, w3_ref[...], preferred_element_type=jnp.float32,
                 precision=_HIGHEST) + b3_ref[...]
    h2 = jnp.maximum(h2, 0.0)
    logits = jnp.dot(h2, w4_ref[...], preferred_element_type=jnp.float32,
                     precision=_HIGHEST) + b4_ref[...]
    dec_ref[...] = jax.nn.sigmoid(logits).astype(dec_ref.dtype)


def _round_up(n, m):
    return ((n + m - 1) // m) * m


def _choose_tb(batch, input_dim, encoded_dim, block_b):
    """Pick the batch-tile size (rows, multiple of 8 sublanes)."""
    b8 = _round_up(batch, 8)
    if block_b is None:
        # Streamed per-row bytes (f32): x in + enc out + dec out.
        # Double-buffered streamed tiles must fit a conservative 12 MiB
        # budget -> safe under v5e's 16 MiB scoped-VMEM default and far below
        # v6e (32 MiB default / 128 MiB phys) and v7x (32 MiB / 64 MiB phys).
        budget = 12 << 20
        row_bytes = 4 * (2 * input_dim + encoded_dim)
        tb = min(budget // (2 * row_bytes), 8192)
    else:
        tb = block_b
    tb = min(tb, b8)                       # never exceed the (padded) batch
    if batch > 8:
        # Guarantee >= 2 grid steps so the "parallel" batch axis can feed both
        # v7x TensorCores (harmless on v5e/v6e).
        tb = min(tb, _round_up(pl.cdiv(batch, 2), 8))
    return max(8, (tb // 8) * 8)


@functools.partial(jax.jit, static_argnames=("block_b",))
def autoencoder_forward(x, params, *, block_b=None):
    """x: [B, input_dim] f32. params: dict of (W, b) for the 4 Linear layers.

    Returns (encoded [B, encoded_dim], decoded [B, input_dim]).
    """
    B, input_dim = x.shape
    encoded_dim = params["w2"].shape[1]

    TB = _choose_tb(B, input_dim, encoded_dim, block_b)
    grid = (pl.cdiv(B, TB),)   # partial last block handled by Pallas masking

    def stream(feat):
        # Tiles the batch (sublane) axis; feature axis is the full array dim.
        return pl.BlockSpec((TB, feat), lambda i: (i, 0))

    def resident(a):
        # Constant index_map -> DMA'd once, VMEM-resident across all steps.
        return pl.BlockSpec(a.shape, lambda i: (0, 0))

    args = (x,
            params["w1"], params["b1"],
            params["w2"], params["b2"],
            params["w3"], params["b3"],
            params["w4"], params["b4"])

    in_specs = [stream(input_dim)] + [resident(a) for a in args[1:]]

    enc, dec = pl.pallas_call(
        _autoencoder_kernel,
        out_shape=(
            jax.ShapeDtypeStruct((B, encoded_dim), x.dtype),
            jax.ShapeDtypeStruct((B, input_dim), x.dtype),
        ),
        grid=grid,
        in_specs=in_specs,
        out_specs=(stream(encoded_dim), stream(input_dim)),
        compiler_params=pltpu.CompilerParams(
            dimension_semantics=("parallel",),
        ),
    )(*args)

    return enc, dec


def init_params(key, input_dim, encoded_dim, hidden=64):
    """PyTorch-Linear-style init: U(-1/sqrt(fan_in), 1/sqrt(fan_in)).

    Weights stored as [in_features, out_features] so the kernel computes
    y = x @ W + b (== PyTorch's x @ W.T with W [out, in]). Biases are (1, out)
    rows for clean broadcasting inside the kernel.
    """
    def linear(key, fan_in, fan_out):
        kw, kb = jax.random.split(key)
        bound = 1.0 / jnp.sqrt(float(fan_in))
        w = jax.random.uniform(kw, (fan_in, fan_out), jnp.float32, -bound, bound)
        b = jax.random.uniform(kb, (1, fan_out), jnp.float32, -bound, bound)
        return w, b

    k1, k2, k3, k4 = jax.random.split(key, 4)
    w1, b1 = linear(k1, input_dim, hidden)
    w2, b2 = linear(k2, hidden, encoded_dim)
    w3, b3 = linear(k3, encoded_dim, hidden)
    w4, b4 = linear(k4, hidden, input_dim)
    return dict(w1=w1, b1=b1, w2=w2, b2=b2, w3=w3, b3=b3, w4=w4, b4=b4)


def reference_forward(x, p):
    h1 = jnp.maximum(jnp.dot(x, p["w1"], precision=_HIGHEST) + p["b1"], 0.0)
    enc = jnp.maximum(jnp.dot(h1, p["w2"], precision=_HIGHEST) + p["b2"], 0.0)
    h2 = jnp.maximum(jnp.dot(enc, p["w3"], precision=_HIGHEST) + p["b3"], 0.0)
    dec = jax.nn.sigmoid(jnp.dot(h2, p["w4"], precision=_HIGHEST) + p["b4"])
    return enc, dec


if __name__ == "__main__":
    key = jax.random.PRNGKey(0)
    kx, kp, kx2 = jax.random.split(key, 3)

    input_dim, encoded_dim = 32, 16
    params = init_params(kp, input_dim, encoded_dim)

    # Case 1: auto-derived TB -> TB=32, 2-step "parallel" grid (both v7x TCs
    # busy; neutral on v5e/v6e), no pad / no slice-back.
    batch = 64
    x = jax.random.uniform(kx, (batch, input_dim), jnp.float32)
    enc, dec = autoencoder_forward(x, params)
    jax.block_until_ready((enc, dec))
    enc_ref, dec_ref = reference_forward(x, params)
    assert enc.shape == (batch, encoded_dim) and dec.shape == (batch, input_dim)
    assert jnp.allclose(enc, enc_ref, atol=1e-5, rtol=1e-5)
    assert jnp.allclose(dec, dec_ref, atol=1e-5, rtol=1e-5)

    # Case 2: ragged batch (20 rows, TB=8 -> 3 grid steps, masked partial last
    # block) -- exercises the no-pad / OOB-store-dropped path.
    batch2 = 20
    x2 = jax.random.uniform(kx2, (batch2, input_dim), jnp.float32)
    enc2, dec2 = autoencoder_forward(x2, params, block_b=8)
    jax.block_until_ready((enc2, dec2))
    enc2_ref, dec2_ref = reference_forward(x2, params)
    assert enc2.shape == (batch2, encoded_dim) and dec2.shape == (batch2, input_dim)
    assert jnp.allclose(enc2, enc2_ref, atol=1e-5, rtol=1e-5)
    assert jnp.allclose(dec2, dec2_ref, atol=1e-5, rtol=1e-5)

    print("KERNEL_OK")
</pallas_src>

<mosaic_0001>
module attributes {stable_mosaic.version = 11 : i64} {
  func.func @_autoencoder_kernel(%arg0: i32, %arg1: memref<32x32xf32, #tpu.memory_space<vmem>>, %arg2: memref<32x64xf32, #tpu.memory_space<vmem>>, %arg3: memref<1x64xf32, #tpu.memory_space<vmem>>, %arg4: memref<64x16xf32, #tpu.memory_space<vmem>>, %arg5: memref<1x16xf32, #tpu.memory_space<vmem>>, %arg6: memref<16x64xf32, #tpu.memory_space<vmem>>, %arg7: memref<1x64xf32, #tpu.memory_space<vmem>>, %arg8: memref<64x32xf32, #tpu.memory_space<vmem>>, %arg9: memref<1x32xf32, #tpu.memory_space<vmem>>, %arg10: memref<32x16xf32, #tpu.memory_space<vmem>>, %arg11: memref<32x32xf32, #tpu.memory_space<vmem>>) attributes {dimension_semantics = [#tpu.dimension_semantics<parallel>], iteration_bounds = array<i64: 2>, scalar_prefetch = 0 : i64, scratch_operands = 0 : i64, tpu.core_type = #tpu.core_type<tc>, window_params = [{transform_indices = @transform_0, window_bounds = array<i64: 32, 32>}, {pipeline_mode = #tpu.pipeline_mode<synchronous>, transform_indices = @transform_1, window_bounds = array<i64: 32, 64>}, {pipeline_mode = #tpu.pipeline_mode<synchronous>, transform_indices = @transform_2, window_bounds = array<i64: 1, 64>}, {pipeline_mode = #tpu.pipeline_mode<synchronous>, transform_indices = @transform_3, window_bounds = array<i64: 64, 16>}, {pipeline_mode = #tpu.pipeline_mode<synchronous>, transform_indices = @transform_4, window_bounds = array<i64: 1, 16>}, {pipeline_mode = #tpu.pipeline_mode<synchronous>, transform_indices = @transform_5, window_bounds = array<i64: 16, 64>}, {pipeline_mode = #tpu.pipeline_mode<synchronous>, transform_indices = @transform_6, window_bounds = array<i64: 1, 64>}, {pipeline_mode = #tpu.pipeline_mode<synchronous>, transform_indices = @transform_7, window_bounds = array<i64: 64, 32>}, {pipeline_mode = #tpu.pipeline_mode<synchronous>, transform_indices = @transform_8, window_bounds = array<i64: 1, 32>}, {transform_indices = @transform_9, window_bounds = array<i64: 32, 16>}, {transform_indices = @transform_10, window_bounds = array<i64: 32, 32>}]} {
    %c0 = arith.constant 0 : index
    %c0_0 = arith.constant 0 : index
    %0 = vector.load %arg1[%c0, %c0_0] : memref<32x32xf32, #tpu.memory_space<vmem>>, vector<32x32xf32>
    %c0_1 = arith.constant 0 : index
    %c0_2 = arith.constant 0 : index
    %1 = vector.load %arg2[%c0_1, %c0_2] : memref<32x64xf32, #tpu.memory_space<vmem>>, vector<32x64xf32>
    %cst = arith.constant dense<0.000000e+00> : vector<32x64xf32>
    %2 = tpu.matmul %0, %1, %cst {dimension_numbers = #tpu.dot_dimension_numbers<[1], [0], [0], [1], [0, 0, 1, 1], [], []>, precision = #tpu.contract_precision<fp32>} : vector<32x32xf32>, vector<32x64xf32>, vector<32x64xf32> -> vector<32x64xf32>
    %c0_3 = arith.constant 0 : index
    %c0_4 = arith.constant 0 : index
    %3 = vector.load %arg3[%c0_3, %c0_4] : memref<1x64xf32, #tpu.memory_space<vmem>>, vector<1x64xf32>
    %4 = vector.broadcast %3 : vector<1x64xf32> to vector<32x64xf32>
    %5 = arith.addf %2, %4 : vector<32x64xf32>
    %cst_5 = arith.constant 0.000000e+00 : f32
    %6 = vector.broadcast %cst_5 : f32 to vector<32x64xf32>
    %7 = arith.maximumf %5, %6 : vector<32x64xf32>
    %c0_6 = arith.constant 0 : index
    %c0_7 = arith.constant 0 : index
    %8 = vector.load %arg4[%c0_6, %c0_7] : memref<64x16xf32, #tpu.memory_space<vmem>>, vector<64x16xf32>
    %cst_8 = arith.constant dense<0.000000e+00> : vector<32x16xf32>
    %9 = tpu.matmul %7, %8, %cst_8 {dimension_numbers = #tpu.dot_dimension_numbers<[1], [0], [0], [1], [0, 0, 1, 1], [], []>, precision = #tpu.contract_precision<fp32>} : vector<32x64xf32>, vector<64x16xf32>, vector<32x16xf32> -> vector<32x16xf32>
    %c0_9 = arith.constant 0 : index
    %c0_10 = arith.constant 0 : index
    %10 = vector.load %arg5[%c0_9, %c0_10] : memref<1x16xf32, #tpu.memory_space<vmem>>, vector<1x16xf32>
    %11 = vector.broadcast %10 : vector<1x16xf32> to vector<32x16xf32>
    %12 = arith.addf %9, %11 : vector<32x16xf32>
    %cst_11 = arith.constant 0.000000e+00 : f32
    %13 = vector.broadcast %cst_11 : f32 to vector<32x16xf32>
    %14 = arith.maximumf %12, %13 : vector<32x16xf32>
    %c0_12 = arith.constant 0 : index
    %c0_13 = arith.constant 0 : index
    %15 = vector.load %arg10[%c0_12, %c0_13] : memref<32x16xf32, #tpu.memory_space<vmem>>, vector<32x16xf32>
    tpu.vector_store %arg10[%c0_12, %c0_13], %14 {strides = array<i32>} : memref<32x16xf32, #tpu.memory_space<vmem>>, vector<32x16xf32>,
    %c0_14 = arith.constant 0 : index
    %c0_15 = arith.constant 0 : index
    %16 = vector.load %arg6[%c0_14, %c0_15] : memref<16x64xf32, #tpu.memory_space<vmem>>, vector<16x64xf32>
    %cst_16 = arith.constant dense<0.000000e+00> : vector<32x64xf32>
    %17 = tpu.matmul %14, %16, %cst_16 {dimension_numbers = #tpu.dot_dimension_numbers<[1], [0], [0], [1], [0, 0, 1, 1], [], []>, precision = #tpu.contract_precision<fp32>} : vector<32x16xf32>, vector<16x64xf32>, vector<32x64xf32> -> vector<32x64xf32>
    %c0_17 = arith.constant 0 : index
    %c0_18 = arith.constant 0 : index
    %18 = vector.load %arg7[%c0_17, %c0_18] : memref<1x64xf32, #tpu.memory_space<vmem>>, vector<1x64xf32>
    %19 = vector.broadcast %18 : vector<1x64xf32> to vector<32x64xf32>
    %20 = arith.addf %17, %19 : vector<32x64xf32>
    %cst_19 = arith.constant 0.000000e+00 : f32
    %21 = vector.broadcast %cst_19 : f32 to vector<32x64xf32>
    %22 = arith.maximumf %20, %21 : vector<32x64xf32>
    %c0_20 = arith.constant 0 : index
    %c0_21 = arith.constant 0 : index
    %23 = vector.load %arg8[%c0_20, %c0_21] : memref<64x32xf32, #tpu.memory_space<vmem>>, vector<64x32xf32>
    %cst_22 = arith.constant dense<0.000000e+00> : vector<32x32xf32>
    %24 = tpu.matmul %22, %23, %cst_22 {dimension_numbers = #tpu.dot_dimension_numbers<[1], [0], [0], [1], [0, 0, 1, 1], [], []>, precision = #tpu.contract_precision<fp32>} : vector<32x64xf32>, vector<64x32xf32>, vector<32x32xf32> -> vector<32x32xf32>
    %c0_23 = arith.constant 0 : index
    %c0_24 = arith.constant 0 : index
    %25 = vector.load %arg9[%c0_23, %c0_24] : memref<1x32xf32, #tpu.memory_space<vmem>>, vector<1x32xf32>
    %26 = vector.broadcast %25 : vector<1x32xf32> to vector<32x32xf32>
    %27 = arith.addf %24, %26 : vector<32x32xf32>
    %28 = arith.negf %27 : vector<32x32xf32>
    %29 = math.exp %28 : vector<32x32xf32>
    %cst_25 = arith.constant 1.000000e+00 : f32
    %30 = vector.broadcast %cst_25 : f32 to vector<32x32xf32>
    %31 = arith.addf %30, %29 : vector<32x32xf32>
    %32 = arith.divf %30, %31 : vector<32x32xf32>
    %c0_26 = arith.constant 0 : index
    %c0_27 = arith.constant 0 : index
    %33 = vector.load %arg11[%c0_26, %c0_27] : memref<32x32xf32, #tpu.memory_space<vmem>>, vector<32x32xf32>
    tpu.vector_store %arg11[%c0_26, %c0_27], %32 {strides = array<i32>} : memref<32x32xf32, #tpu.memory_space<vmem>>, vector<32x32xf32>,
    return
  }
  func.func @transform_0(%arg0: i32) -> (i32, i32) {
    %c0_i32 = arith.constant 0 : i32
    %c0_i32_0 = arith.constant 0 : i32
    return %arg0, %c0_i32 : i32, i32
  }
  func.func @transform_1(%arg0: i32) -> (i32, i32) {
    %c0_i32 = arith.constant 0 : i32
    %c0_i32_0 = arith.constant 0 : i32
    %c0_i32_1 = arith.constant 0 : i32
    return %c0_i32, %c0_i32_0 : i32, i32
  }
  func.func @transform_2(%arg0: i32) -> (i32, i32) {
    %c0_i32 = arith.constant 0 : i32
    %c0_i32_0 = arith.constant 0 : i32
    %c0_i32_1 = arith.constant 0 : i32
    return %c0_i32, %c0_i32_0 : i32, i32
  }
  func.func @transform_3(%arg0: i32) -> (i32, i32) {
    %c0_i32 = arith.constant 0 : i32
    %c0_i32_0 = arith.constant 0 : i32
    %c0_i32_1 = arith.constant 0 : i32
    return %c0_i32, %c0_i32_0 : i32, i32
  }
  func.func @transform_4(%arg0: i32) -> (i32, i32) {
    %c0_i32 = arith.constant 0 : i32
    %c0_i32_0 = arith.constant 0 : i32
    %c0_i32_1 = arith.constant 0 : i32
    return %c0_i32, %c0_i32_0 : i32, i32
  }
  func.func @transform_5(%arg0: i32) -> (i32, i32) {
    %c0_i32 = arith.constant 0 : i32
    %c0_i32_0 = arith.constant 0 : i32
    %c0_i32_1 = arith.constant 0 : i32
    return %c0_i32, %c0_i32_0 : i32, i32
  }
  func.func @transform_6(%arg0: i32) -> (i32, i32) {
    %c0_i32 = arith.constant 0 : i32
    %c0_i32_0 = arith.constant 0 : i32
    %c0_i32_1 = arith.constant 0 : i32
    return %c0_i32, %c0_i32_0 : i32, i32
  }
  func.func @transform_7(%arg0: i32) -> (i32, i32) {
    %c0_i32 = arith.constant 0 : i32
    %c0_i32_0 = arith.constant 0 : i32
    %c0_i32_1 = arith.constant 0 : i32
    return %c0_i32, %c0_i32_0 : i32, i32
  }
  func.func @transform_8(%arg0: i32) -> (i32, i32) {
    %c0_i32 = arith.constant 0 : i32
    %c0_i32_0 = arith.constant 0 : i32
    %c0_i32_1 = arith.constant 0 : i32
    return %c0_i32, %c0_i32_0 : i32, i32
  }
  func.func @transform_9(%arg0: i32) -> (i32, i32) {
    %c0_i32 = arith.constant 0 : i32
    %c0_i32_0 = arith.constant 0 : i32
    return %arg0, %c0_i32 : i32, i32
  }
  func.func @transform_10(%arg0: i32) -> (i32, i32) {
    %c0_i32 = arith.constant 0 : i32
    %c0_i32_0 = arith.constant 0 : i32
    return %arg0, %c0_i32 : i32, i32
  }
}

</mosaic_0001>

<bundles_post_ra>
// kernel: autoencoder_forward.1
= control target key start
LH: loop header
LB: loop body
LE: loop exit
PB: predicated region body
PF: predicated region fallthrough
CT: control target
= control target key end

     0   :  { %s4254_s13 = smov 0   ;;  %s4675_s0 = inlined_call_operand.vmem [shape: f32[64,32], index: 0, kind: input, shape index: {}]   ;;  %s4676_s1 = inlined_call_operand.vmem [shape: f32[32,64], index: 1, kind: input, shape index: {}]   ;;  %s4677_s2 = inlined_call_operand.vmem [shape: f32[1,64], index: 2, kind: input, shape index: {}]   ;;  %s4678_s3 = inlined_call_operand.vmem [shape: f32[64,16], index: 3, kind: input, shape index: {}]   ;;  %s4679_s4 = inlined_call_operand.vmem [shape: f32[1,16], index: 4, kind: input, shape index: {}]   ;;  %s4680_s5 = inlined_call_operand.vmem [shape: f32[16,64], index: 5, kind: input, shape index: {}]   ;;  %s4681_s6 = inlined_call_operand.vmem [shape: f32[1,64], index: 6, kind: input, shape index: {}]   ;;  %s4682_s7 = inlined_call_operand.vmem [shape: f32[64,32], index: 7, kind: input, shape index: {}]   ;;  %s4683_s8 = inlined_call_operand.vmem [shape: f32[1,32], index: 8, kind: input, shape index: {}]   ;;  %s4684_s9 = inlined_call_operand.vmem [shape: f32[64,16], index: 9, kind: output, shape index: {0}]   ;;  %s4685_s10 = inlined_call_operand.vmem [shape: f32[64,32], index: 10, kind: output, shape index: {1}]  }
   0x1 LB: > { %s3150_s14 = sadd.s32 4294967295, %s4197_s13   ;;  %p3154_p0 = scmp.ge.s32.totalorder %s4197_s13, 1  ;;  %s4197_s13 = sphi %s4254_s13, %s21_s13  }
   0x2   : > { %p316_p1 = scmp.lt.s32.totalorder %s4197_s13, 3 }
   0x4   : > { %p317_p2 = pnand %p3154_p0, %p316_p1 }
   0x5   : > { %v381_v0 = vld [vmem:[%s4676_s1] sm:$0xff] (!%p317_p2)  ;;  %v382_v1 = vld [vmem:[%s4676_s1 + $0x8] sm:$0xff] (!%p317_p2)  ;;  %v383_v2 = vld [vmem:[%s4676_s1 + $0x10] sm:$0xff] (!%p317_p2)  ;;  %s3155_s21 = sshll.u32 (!%p317_p2), %s3150_s14, 2  ;;  %vm392_vm0 = vcmask (!%p317_p2), 261120   ;;  %vm1038_vm1 = vcmask (!%p317_p2), 523264  }
   0x6   : > { %320 = sbr.rel (%p317_p2) target bundleno = 1157 (0x485), region = 56  ;;  %v406_v3 = vand.u32 (!%p317_p2), 4294901760, %v381_v0  ;;  %v409_v4 = vand.u32 (!%p317_p2), 4294901760, %v382_v1  ;;  %v384_v5 = vld [vmem:[%s4676_s1 + $0x18] sm:$0xff] (!%p317_p2)  ;;  %v412_v6 = vand.u32 (!%p317_p2), 4294901760, %v383_v2  ;;  %p360_p3 = scmp.lt.s32.totalorder (!%p317_p2), %s3155_s21, 7 }
   0x7   : > { %v415_v7 = vand.u32 (!%p317_p2), 4294901760, %v384_v5  ;;  %v1023_v60 = vld [vmem:[%s4678_s3] sm:$0xff] (!%p317_p2)  ;;  %v1024_v61 = vld [vmem:[%s4678_s3 + $0x8] sm:$0xff] (!%p317_p2)  ;;  %vm1721_vm2 = vcmask (!%p317_p2), 130048  }
   0x8   : > { %v4274_v8 = vpack.c.bf16 (!%p317_p2), %v409_v4, %v406_v3  ;;  %v4276_v9 = vsub.f32 (!%p317_p2), %v381_v0, %v406_v3  ;;  %v4278_v10 = vsub.f32 (!%p317_p2), %v382_v1, %v409_v4  ;;  %v4280_v11 = vsub.f32 (!%p317_p2), %v383_v2, %v412_v6  ;;  %v1025_v1 = vld [vmem:[%s4678_s3 + $0x10] sm:$0xff] (!%p317_p2)  ;;  %v1026_v2 = vld [vmem:[%s4678_s3 + $0x18] sm:$0xff] (!%p317_p2) }
   0x9   : > { %v4282_v12 = vpack.c.bf16 (!%p317_p2), %v415_v7, %v412_v6  ;;  %v4284_v13 = vsub.f32 (!%p317_p2), %v384_v5, %v415_v7  ;;  %v1052_v62 = vand.u32 (!%p317_p2), 4294901760, %v1023_v60  ;;  %v1055_v63 = vand.u32 (!%p317_p2), 4294901760, %v1024_v61  ;;  %v1027_v6 = vld [vmem:[%s4678_s3 + $0x20] sm:$0xff] (!%p317_p2)  ;;  %v1028_v7 = vld [vmem:[%s4678_s3 + $0x28] sm:$0xff] (!%p317_p2) }
   0xa   : > { %3808 = vmatprep.subr.bf16.mxu0 (!%p317_p2), %v4274_v8  ;;  %v517_v14 = vand.u32 (!%p317_p2), 4294901760, %v4276_v9  ;;  %v524_v15 = vand.u32 (!%p317_p2), 4294901760, %v4278_v10  ;;  %v531_v16 = vand.u32 (!%p317_p2), 4294901760, %v4280_v11  ;;  %v3823_v56 = vpack.c.bf16 (!%p317_p2), %v4278_v10, %v4276_v9 }
   0xb   : > { %3810 = vmatpush3.bf16.msra.mxu0 (!%p317_p2), %v4274_v8  ;;  %v538_v17 = vand.u32 (!%p317_p2), 4294901760, %v4284_v13  ;;  %v3827_v57 = vpack.c.bf16 (!%p317_p2), %v4284_v13, %v4280_v11  ;;  %v4366_v0 = vpack.c.bf16 (!%p317_p2), %v1055_v63, %v1052_v62  ;;  %v1058_v3 = vand.u32 (!%p317_p2), 4294901760, %v1025_v1 }
   0xc   : > { %3812 = vmatprep.subr.bf16.mxu0 (!%p317_p2), %v4282_v12  ;;  %v518_v19 = vsub.f32 (!%p317_p2), %v4276_v9, %v517_v14  ;;  %v525_v20 = vsub.f32 (!%p317_p2), %v4278_v10, %v524_v15  ;;  %v532_v32 = vsub.f32 (!%p317_p2), %v4280_v11, %v531_v16  ;;  %v3839_v58 = vpack.c.bf16 (!%p317_p2), %v524_v15, %v517_v14  ;;  %v1030_v14 = vld [vmem:[%s4678_s3 + $0x38] sm:$0xff] (!%p317_p2) }
   0xd   : > { %s4687_s21 = smov (!%p360_p3, %s3155_s21), 7  ;;  %v539_v33 = vsub.f32 %v4284_v13, %v538_v17  ;;  %v3843_v59 = vpack.c.bf16 %v538_v17, %v531_v16  ;;  %3856 = vmatprep.subr.bf16.mxu1 %v4366_v0  ;;  %v1061_v4 = vand.u32 4294901760, %v1026_v2  ;;  %v1067_v9 = vand.u32 4294901760, %v1028_v7  ;;  %v1029_v13 = vld [vmem:[%s4678_s3 + $0x30] sm:$0xff] }
   0xe   : > { %s4287_s24 = sshll.u32 %s4687_s21, 3  ;;  %v519_v28 = vand.u32 4294901760, %v518_v19  ;;  %v526_v29 = vand.u32 4294901760, %v525_v20  ;;  %v533_v44 = vand.u32 4294901760, %v532_v32  ;;  %3858 = vmatpush3.bf16.msra.mxu1 %v4366_v0  ;;  %v1166_v11 = vsub.f32 %v1023_v60, %v1052_v62  ;;  %v3161_v60 = vld [vmem:[%s4677_s2] ss:$0 sm:$0xff] }
   0xf   : > { %s363_s27 = scalar_lea.vmem %s4675_s0, %s4287_s24  ;;  %3814 = vmatpush3.bf16.msra.mxu0 %v4282_v12  ;;  %v540_v45 = vand.u32 4294901760, %v539_v33  ;;  %v4376_v5 = vpack.c.bf16 %v1061_v4, %v1058_v3  ;;  %v1070_v15 = vand.u32 4294901760, %v1029_v13  ;;  %v1073_v16 = vand.u32 4294901760, %v1030_v14  ;;  %s369_s21 = scalar_lea.vmem %s4684_s9, %s4287_s24 }
  0x10   : > { %v377_v18 = vld [vmem:[%s363_s27] sm:$0xff]  ;;  %v378_v21 = vld [vmem:[%s363_s27 + $0x8] sm:$0xff]  ;;  %v379_v22 = vld [vmem:[%s363_s27 + $0x10] sm:$0xff]  ;;  %v3815_v36 = vpack.c.bf16 %v526_v29, %v519_v28  ;;  %v1167_v17 = vand.u32 4294901760, %v1166_v11  ;;  %v1201_v32 = vsub.f32 %v1028_v7, %v1067_v9  ;;  %s375_s22 = scalar_lea.vmem %s4685_s10, %s4287_s24 }
  0x11   : > { %v394_v23 = vsel %vm392_vm0, %v377_v18, 0  ;;  %v397_v24 = vsel %vm392_vm0, %v378_v21, 0  ;;  %v400_v25 = vsel %vm392_vm0, %v379_v22, 0  ;;  %v380_v26 = vld [vmem:[%s363_s27 + $0x18] sm:$0xff]  ;;  %v3819_v54 = vpack.c.bf16 %v540_v45, %v533_v44  ;;  %3860 = vmatprep.subr.bf16.mxu1 %v4376_v5 }
  0x12   : > { %v4308_v27 = vand.u32 4294901760, %v394_v23  ;;  %v4310_v30 = vand.u32 4294901760, %v397_v24  ;;  %v4313_v31 = vand.u32 4294901760, %v400_v25  ;;  %v403_v34 = vsel %vm392_vm0, %v380_v26, 0  ;;  %3816 = vmatprep.subr.bf16.mxu0 %v3815_v36  ;;  %3862 = vmatpush3.bf16.msra.mxu1 %v4376_v5 }
  0x13   : > { %v4324_v38 = vand.u32 4294901760, %v403_v34  ;;  %v4396_v19 = vpack.c.bf16 %v1073_v16, %v1070_v15  ;;  %v1168_v20 = vsub.f32 %v1166_v11, %v1167_v17  ;;  %v1180_v22 = vsub.f32 %v1025_v1, %v1058_v3 }
  0x14   : > { %v475_v35 = vsub.f32 %v394_v23, %v4308_v27  ;;  %v485_v37 = vsub.f32 %v397_v24, %v4310_v30  ;;  %v495_v39 = vsub.f32 %v400_v25, %v4313_v31  ;;  %v1187_v23 = vsub.f32 %v1026_v2, %v1061_v4 }
  0x15   : > { %v505_v42 = vsub.f32 %v403_v34, %v4324_v38  ;;  %v1169_v24 = vand.u32 4294901760, %v1168_v20  ;;  %v1181_v26 = vand.u32 4294901760, %v1180_v22 }
  0x16   : > { %v476_v40 = vand.u32 4294901760, %v475_v35  ;;  %v486_v41 = vand.u32 4294901760, %v485_v37  ;;  %v496_v43 = vand.u32 4294901760, %v495_v39 }
  0x17   : > { %v506_v48 = vand.u32 4294901760, %v505_v42  ;;  %v1182_v29 = vsub.f32 %v1180_v22, %v1181_v26 }
  0x18   : > { %v477_v46 = vsub.f32 %v475_v35, %v476_v40  ;;  %v487_v47 = vsub.f32 %v485_v37, %v486_v41  ;;  %v497_v49 = vsub.f32 %v495_v39, %v496_v43 }
  0x19   : > { %v507_v52 = vsub.f32 %v505_v42, %v506_v48  ;;  %v1183_v33 = vand.u32 4294901760, %v1182_v29 }
  0x1a   : > { %v478_v50 = vand.u32 4294901760, %v477_v46  ;;  %v488_v51 = vand.u32 4294901760, %v487_v47  ;;  %v498_v53 = vand.u32 4294901760, %v497_v49 }
  0x1b   : > { %v508_v55 = vand.u32 4294901760, %v507_v52 }
  0x1c   : > { %3407 = vmatprep.mubr.f32.mxu0 %v478_v50 }
  0x1d   : > { %3408 = vmatmul.mubr.f32.vlgmr.msra.gmra.mrb[0].mxu0 %v488_v51 }
  0x1e   : > { %3818 = vmatpush3.bf16.msra.mxu0 %v3815_v36  ;;  %3410 = vmatprep.mubr.f32.mxu0 %v498_v53  ;;  %v1202_v36 = vand.u32 4294901760, %v1201_v32  ;;  %v3891_v53 = vpack.c.bf16 %v1187_v23, %v1180_v22 }
  0x1f   : > { %3820 = vmatprep.subr.bf16.mxu0 %v3819_v54 }
  0x21   : > { %3411 = vmatmul.mubr.f32.gmra.mrb[2].mxu0 %v508_v55 }
  0x22   : > { %3822 = vmatpush3.bf16.msra.mxu0 %v3819_v54  ;;  %3421 = vmatprep.mubr.f32.mxu0 %v4308_v27 }
  0x23   : > { %3824 = vmatprep.subr.bf16.mxu0 %v3823_v56 }
  0x25   : > { %3422 = vmatmul.mubr.f32.vlgmr.msra.gmra.mrb[0].mxu0 %v4310_v30 }
  0x26   : > { %3826 = vmatpush3.bf16.msra.mxu0 %v3823_v56  ;;  %3424 = vmatprep.mubr.f32.mxu0 %v4313_v31 }
  0x27   : > { %3828 = vmatprep.subr.bf16.mxu0 %v3827_v57 }
  0x29   : > { %3425 = vmatmul.mubr.f32.gmra.mrb[2].mxu0 %v4324_v38 }
  0x2a   : > { %3830 = vmatpush3.bf16.msra.mxu0 %v3827_v57  ;;  %3435 = vmatprep.mubr.f32.mxu0 %v475_v35 }
  0x2b   : > { %3832 = vmatprep.subr.bf16.mxu0 %v4274_v8 }
  0x2d   : > { %3436 = vmatmul.mubr.f32.vlgmr.msra.gmra.mrb[0].mxu0 %v485_v37 }
  0x2e   : > { %3834 = vmatpush3.bf16.msra.mxu0 %v4274_v8  ;;  %3438 = vmatprep.mubr.f32.mxu0 %v495_v39  ;;  %v1203_v39 = vsub.f32 %v1201_v32, %v1202_v36 }
  0x2f   : > { %3836 = vmatprep.subr.bf16.mxu0 %v4282_v12 }
  0x31   : > { %3439 = vmatmul.mubr.f32.gmra.mrb[2].mxu0 %v505_v42 }
  0x32   : > { %3838 = vmatpush3.bf16.msra.mxu0 %v4282_v12  ;;  %3449 = vmatprep.mubr.f32.mxu0 %v476_v40  ;;  %v1208_v40 = vsub.f32 %v1029_v13, %v1070_v15 }
  0x33   : > { %3840 = vmatprep.subr.bf16.mxu0 %v3839_v58 }
  0x34   : > { %v1209_v44 = vand.u32 4294901760, %v1208_v40 }
  0x35   : > { %3450 = vmatmul.mubr.f32.vlgmr.msra.gmra.mrb[0].mxu0 %v486_v41  ;;  %v1215_v41 = vsub.f32 %v1030_v14, %v1073_v16 }
  0x36   : > { %3842 = vmatpush3.bf16.msra.mxu0 %v3839_v58  ;;  %3452 = vmatprep.mubr.f32.mxu0 %v496_v43  ;;  %v1204_v43 = vand.u32 4294901760, %v1203_v39  ;;  %v1210_v47 = vsub.f32 %v1208_v40, %v1209_v44 }
  0x37   : > { %3844 = vmatprep.subr.bf16.mxu0 %v3843_v59  ;;  %v1216_v45 = vand.u32 4294901760, %v1215_v41  ;;  %v4407_v55 = vpack.c.bf16 %v1215_v41, %v1208_v40 }
  0x38   : > { %v1211_v49 = vand.u32 4294901760, %v1210_v47 }
  0x39   : > { %3453 = vmatmul.mubr.f32.gmra.mrb[2].mxu0 %v506_v48  ;;  %v1217_v48 = vsub.f32 %v1215_v41, %v1216_v45 }
  0x3a   : > { %3846 = vmatpush3.bf16.msra.mxu0 %v3843_v59  ;;  %3463 = vmatprep.mubr.f32.mxu0 %v4308_v27  ;;  %v4415_v59 = vpack.c.bf16 %v1216_v45, %v1209_v44 }
  0x3b   : > { %3848 = vmatprep.subr.bf16.mxu0 %v4274_v8  ;;  %v1218_v50 = vand.u32 4294901760, %v1217_v48 }
  0x3d   : > { %3464 = vmatmul.mubr.f32.vlgmr.msra.gmra.mrb[0].mxu0 %v4310_v30  ;;  %v3883_v51 = vpack.c.bf16 %v1218_v50, %v1211_v49  ;;  %v4494_v49 = vld [vmem:[%s4682_s7] sm:$0xff]  ;;  %v4499_v50 = vld [vmem:[%s4682_s7 + $0x8] sm:$0xff] }
  0x3e   : > { %3850 = vmatpush3.bf16.msra.mxu0 %v4274_v8  ;;  %3466 = vmatprep.mubr.f32.mxu0 %v4313_v31  ;;  %v1064_v8 = vand.u32 4294901760, %v1027_v6 }
  0x3f   : > { %3852 = vmatprep.subr.bf16.mxu0 %v4282_v12 }
  0x40   : > { %v4386_v10 = vpack.c.bf16 %v1067_v9, %v1064_v8 }
  0x41   : > { %3467 = vmatmul.mubr.f32.gmra.mrb[2].mxu0 %v4324_v38 }
  0x42   : > { %3854 = vmatpush3.bf16.msra.mxu0 %v4282_v12  ;;  %3477 = vmatprep.mubr.f32.mxu0 %v4308_v27  ;;  %v1173_v12 = vsub.f32 %v1024_v61, %v1055_v63  ;;  %v1188_v27 = vand.u32 4294901760, %v1187_v23 }
  0x43   : > { %3864 = vmatprep.subr.bf16.mxu1 %v4386_v10 }
  0x44   : > { %v1174_v18 = vand.u32 4294901760, %v1173_v12  ;;  %3866 = vmatpush3.bf16.msra.mxu1 %v4386_v10  ;;  %v3887_v52 = vpack.c.bf16 %v1173_v12, %v1166_v11  ;;  %v4411_v57 = vpack.c.bf16 %v1188_v27, %v1181_v26 }
  0x45   : > { %3478 = vmatmul.mubr.f32.vlgmr.msra.gmra.mrb[0].mxu0 %v4310_v30  ;;  %3868 = vmatprep.subr.bf16.mxu1 %v4396_v19  ;;  %v1189_v30 = vsub.f32 %v1187_v23, %v1188_v27 }
  0x46   : > { %3480 = vmatprep.mubr.f32.mxu0 %v4313_v31  ;;  %v1175_v21 = vsub.f32 %v1173_v12, %v1174_v18  ;;  %v1194_v31 = vsub.f32 %v1027_v6, %v1064_v8  ;;  %v4409_v56 = vpack.c.bf16 %v1174_v18, %v1167_v17 }
  0x47   : > { %v1190_v34 = vand.u32 4294901760, %v1189_v30 }
  0x48   : > { %v1176_v25 = vand.u32 4294901760, %v1175_v21  ;;  %3870 = vmatpush3.bf16.msra.mxu1 %v4396_v19  ;;  %v1195_v35 = vand.u32 4294901760, %v1194_v31  ;;  %v4405_v54 = vpack.c.bf16 %v1201_v32, %v1194_v31 }
  0x49   : > { %3481 = vmatmul.mubr.f32.gmra.mrb[2].mxu0 %v4324_v38  ;;  %v4403_v37 = vpack.c.bf16 %v1190_v34, %v1183_v33 }
  0x4a   : > { %v4400_v28 = vpack.c.bf16 %v1176_v25, %v1169_v24  ;;  %v1196_v38 = vsub.f32 %v1194_v31, %v1195_v35  ;;  %v4413_v58 = vpack.c.bf16 %v1202_v36, %v1195_v35 }
  0x4c   : > { %3872 = vmatprep.subr.bf16.mxu1 %v4400_v28  ;;  %v1197_v42 = vand.u32 4294901760, %v1196_v38 }
  0x4e   : > { %v3879_v46 = vpack.c.bf16 %v1204_v43, %v1197_v42 }
 0x118   : > { %v3479_v61 = vpop.f32.mrb[0].mxu0 }
 0x119   : > { %v4071_v62 = vadd.f32 %v3479_v61, %v3161_v60  ;;  %v997_v63 = vpop.f32.mrb[1].mxu0 }
 0x11a   : > { %v4072_v1 = vadd.f32 %v3161_v60, %v997_v63 }
 0x11b   : > { %v1020_v2 = vmax.f32 %v4071_v62, 0.0 }
 0x11c   : > { %v1019_v3 = vmax.f32 %v4072_v1, 0.0  ;;  %v3482_v4 = vpop.f32.mrb[2].mxu0 }
 0x11d   : > { %v1043_v6 = vsel %vm1038_vm1, %v1020_v2, 0  ;;  %v4073_v7 = vadd.f32 %v3482_v4, %v3161_v60  ;;  %v1009_v8 = vpop.f32.mrb[3].mxu0 }
 0x11e   : > { %v4421_v9 = vand.u32 4294901760, %v1043_v6  ;;  %v1040_v11 = vsel %vm1038_vm1, %v1019_v3, 0  ;;  %v4074_v12 = vadd.f32 %v3161_v60, %v1009_v8 }
 0x11f   : > { %v4424_v13 = vand.u32 4294901760, %v1040_v11  ;;  %v1022_v14 = vmax.f32 %v4073_v7, 0.0 }
 0x120   : > { %v1135_v15 = vsub.f32 %v1043_v6, %v4421_v9  ;;  %v1021_v16 = vmax.f32 %v4074_v12, 0.0 }
 0x121   : > { %v1125_v17 = vsub.f32 %v1040_v11, %v4424_v13  ;;  %v1049_v18 = vsel %vm1038_vm1, %v1022_v14, 0 }
 0x122   : > { %v4429_v20 = vand.u32 4294901760, %v1049_v18  ;;  %v1046_v21 = vsel %vm1038_vm1, %v1021_v16, 0  ;;  %v1136_v22 = vand.u32 4294901760, %v1135_v15 }
 0x123   : > { %v4432_v23 = vand.u32 4294901760, %v1046_v21  ;;  %v1126_v24 = vand.u32 4294901760, %v1125_v17 }
 0x124   : > { %v1155_v25 = vsub.f32 %v1049_v18, %v4429_v20  ;;  %v1137_v26 = vsub.f32 %v1135_v15, %v1136_v22 }
 0x125   : > { %v1145_v27 = vsub.f32 %v1046_v21, %v4432_v23  ;;  %v1127_v29 = vsub.f32 %v1125_v17, %v1126_v24 }
 0x126   : > { %v1156_v30 = vand.u32 4294901760, %v1155_v25  ;;  %v1138_v33 = vand.u32 4294901760, %v1137_v26 }
 0x127   : > { %v1128_v31 = vand.u32 4294901760, %v1127_v29  ;;  %v1146_v32 = vand.u32 4294901760, %v1145_v27 }
 0x128   : > { %v1157_v34 = vsub.f32 %v1155_v25, %v1156_v30 }
 0x129   : > { %3499 = vmatprep.mubr.f32.mxu1 %v1128_v31  ;;  %v1147_v35 = vsub.f32 %v1145_v27, %v1146_v32 }
 0x12a   : > { %3500 = vmatmul.mubr.f32.vlgmr.msra.gmra.mrb[0].mxu1 %v1138_v33  ;;  %v1158_v38 = vand.u32 4294901760, %v1157_v34  ;;  %v2342_v33 = vld [vmem:[%s4682_s7 + $0x18] sm:$0xff] }
 0x12b   : > { %3874 = vmatpush3.bf16.msra.mxu1 %v4400_v28  ;;  %v1148_v36 = vand.u32 4294901760, %v1147_v35  ;;  %v2376_v35 = vand.u32 4294901760, %v2342_v33 }
 0x12c   : > { %3876 = vmatprep.subr.bf16.mxu1 %v4403_v37 }
 0x12d   : > { %3502 = vmatprep.mubr.f32.mxu1 %v1148_v36 }
 0x12e   : > { %3503 = vmatmul.mubr.f32.gmra.mrb[2].mxu1 %v1158_v38  ;;  %v2343_v38 = vld [vmem:[%s4682_s7 + $0x20] sm:$0xff] }
 0x12f   : > { %3878 = vmatpush3.bf16.msra.mxu1 %v4403_v37  ;;  %3521 = vmatprep.mubr.f32.mxu1 %v4424_v13 }
 0x130   : > { %3880 = vmatprep.subr.bf16.mxu1 %v3879_v46 }
 0x133   : > { %3882 = vmatpush3.bf16.msra.mxu1 %v3879_v46 }
 0x134   : > { %3884 = vmatprep.subr.bf16.mxu1 %v3883_v51 }
 0x137   : > { %3886 = vmatpush3.bf16.msra.mxu1 %v3883_v51  ;;  %v2367_v51 = vand.u32 4294901760, %v4494_v49 }
 0x138   : > { %3888 = vmatprep.subr.bf16.mxu1 %v3887_v52 }
 0x13a   : > { %3522 = vmatmul.mubr.f32.vlgmr.msra.gmra.mrb[0].mxu1 %v4421_v9 }
 0x13b   : > { %3524 = vmatprep.mubr.f32.mxu1 %v4432_v23  ;;  %3890 = vmatpush3.bf16.msra.mxu1 %v3887_v52  ;;  %v2370_v52 = vand.u32 4294901760, %v4499_v50 }
 0x13c   : > { %3892 = vmatprep.subr.bf16.mxu1 %v3891_v53 }
 0x13e   : > { %3525 = vmatmul.mubr.f32.gmra.mrb[2].mxu1 %v4429_v20 }
 0x13f   : > { %3894 = vmatpush3.bf16.msra.mxu1 %v3891_v53  ;;  %3543 = vmatprep.mubr.f32.mxu1 %v1125_v17  ;;  %v4507_v53 = vpack.c.bf16 %v2370_v52, %v2367_v51 }
 0x140   : > { %3896 = vmatprep.subr.bf16.mxu1 %v4405_v54 }
 0x143   : > { %3898 = vmatpush3.bf16.msra.mxu1 %v4405_v54  ;;  %v3162_v54 = vld [vmem:[%s4679_s4] ss:$0 sm:$0xff] }
 0x144   : > { %3900 = vmatprep.subr.bf16.mxu1 %v4407_v55 }
 0x147   : > { %3902 = vmatpush3.bf16.msra.mxu1 %v4407_v55 }
 0x148   : > { %3904 = vmatprep.subr.bf16.mxu1 %v4366_v0 }
 0x14a   : > { %3544 = vmatmul.mubr.f32.vlgmr.msra.gmra.mrb[0].mxu1 %v1135_v15 }
 0x14b   : > { %3546 = vmatprep.mubr.f32.mxu1 %v1145_v27  ;;  %3906 = vmatpush3.bf16.msra.mxu1 %v4366_v0 }
 0x14c   : > { %3908 = vmatprep.subr.bf16.mxu1 %v4376_v5 }
 0x14e   : > { %3547 = vmatmul.mubr.f32.gmra.mrb[2].mxu1 %v1155_v25 }
 0x14f   : > { %3910 = vmatpush3.bf16.msra.mxu1 %v4376_v5  ;;  %3565 = vmatprep.mubr.f32.mxu1 %v1126_v24 }
 0x150   : > { %3912 = vmatprep.subr.bf16.mxu1 %v4386_v10 }
 0x153   : > { %3914 = vmatpush3.bf16.msra.mxu1 %v4386_v10 }
 0x154   : > { %3916 = vmatprep.subr.bf16.mxu1 %v4396_v19 }
 0x157   : > { %3918 = vmatpush3.bf16.msra.mxu1 %v4396_v19 }
 0x158   : > { %3920 = vmatprep.subr.bf16.mxu1 %v4409_v56 }
 0x15a   : > { %3566 = vmatmul.mubr.f32.vlgmr.msra.gmra.mrb[0].mxu1 %v1136_v22 }
 0x15b   : > { %3568 = vmatprep.mubr.f32.mxu1 %v1146_v32  ;;  %3922 = vmatpush3.bf16.msra.mxu1 %v4409_v56  ;;  %v2341_v32 = vld [vmem:[%s4682_s7 + $0x10] sm:$0xff] }
 0x15c   : > { %3924 = vmatprep.subr.bf16.mxu1 %v4411_v57  ;;  %v2373_v34 = vand.u32 4294901760, %v2341_v32 }
 0x15e   : > { %3569 = vmatmul.mubr.f32.gmra.mrb[2].mxu1 %v1156_v30  ;;  %v4540_v36 = vpack.c.bf16 %v2376_v35, %v2373_v34 }
 0x15f   : > { %3926 = vmatpush3.bf16.msra.mxu1 %v4411_v57  ;;  %3587 = vmatprep.mubr.f32.mxu1 %v4424_v13 }
 0x160   : > { %3928 = vmatprep.subr.bf16.mxu1 %v4413_v58 }
 0x163   : > { %3930 = vmatpush3.bf16.msra.mxu1 %v4413_v58 }
 0x164   : > { %3932 = vmatprep.subr.bf16.mxu1 %v4415_v59 }
 0x167   : > { %3934 = vmatpush3.bf16.msra.mxu1 %v4415_v59 }
 0x168   : > { %3936 = vmatprep.subr.bf16.mxu1 %v4366_v0 }
 0x16a   : > { %3588 = vmatmul.mubr.f32.vlgmr.msra.gmra.mrb[0].mxu1 %v4421_v9 }
 0x16b   : > { %3590 = vmatprep.mubr.f32.mxu1 %v4432_v23  ;;  %3938 = vmatpush3.bf16.msra.mxu1 %v4366_v0  ;;  %v1726_v0 = vld [vmem:[%s4680_s5] sm:$0xff] }
 0x16c   : > { %3940 = vmatprep.subr.bf16.mxu1 %v4376_v5  ;;  %v1748_v28 = vand.u32 4294901760, %v1726_v0 }
 0x16e   : > { %3591 = vmatmul.mubr.f32.gmra.mrb[2].mxu1 %v4429_v20  ;;  %v1856_v39 = vsub.f32 %v1726_v0, %v1748_v28  ;;  %v2344_v0 = vld [vmem:[%s4682_s7 + $0x28] sm:$0xff] }
 0x16f   : > { %3942 = vmatpush3.bf16.msra.mxu1 %v4376_v5  ;;  %3609 = vmatprep.mubr.f32.mxu1 %v4424_v13  ;;  %v1727_v5 = vld [vmem:[%s4680_s5 + $0x8] sm:$0xff] }
 0x170   : > { %3944 = vmatprep.subr.bf16.mxu1 %v4386_v10  ;;  %v1857_v40 = vand.u32 4294901760, %v1856_v39 }
 0x172   : > { %v1858_v42 = vsub.f32 %v1856_v39, %v1857_v40 }
 0x173   : > { %3946 = vmatpush3.bf16.msra.mxu1 %v4386_v10  ;;  %v1751_v10 = vand.u32 4294901760, %v1727_v5 }
 0x174   : > { %3948 = vmatprep.subr.bf16.mxu1 %v4396_v19  ;;  %v1859_v44 = vand.u32 4294901760, %v1858_v42  ;;  %v2481_v42 = vsub.f32 %v4494_v49, %v2367_v51  ;;  %v2502_v49 = vsub.f32 %v2342_v33, %v2376_v35 }
 0x175   : > { %v4485_v37 = vpack.c.bf16 %v1751_v10, %v1748_v28  ;;  %v2382_v28 = vand.u32 4294901760, %v2344_v0 }
 0x177   : > { %3950 = vmatpush3.bf16.msra.mxu1 %v4396_v19  ;;  %v1863_v19 = vsub.f32 %v1727_v5, %v1751_v10  ;;  %3952 = vmatprep.subr.bf16.mxu0 %v4485_v37  ;;  %v2379_v5 = vand.u32 4294901760, %v2343_v38 }
 0x178   : > { %3954 = vmatpush3.bf16.msra.mxu0 %v4485_v37  ;;  %3976 = vmatprep.subr.bf16.mxu1 %v4507_v53 }
 0x179   : > { %v1864_v41 = vand.u32 4294901760, %v1863_v19  ;;  %v3959_v47 = vpack.c.bf16 %v1863_v19, %v1856_v39  ;;  %v4552_v10 = vpack.c.bf16 %v2382_v28, %v2379_v5  ;;  %v2346_v39 = vld [vmem:[%s4682_s7 + $0x38] sm:$0xff] }
 0x17a   : > { %3610 = vmatmul.mubr.f32.vlgmr.msra.gmra.mrb[0].mxu1 %v4421_v9 }
 0x17b   : > { %3612 = vmatprep.mubr.f32.mxu1 %v4432_v23  ;;  %v1865_v43 = vsub.f32 %v1863_v19, %v1864_v41  ;;  %v4489_v48 = vpack.c.bf16 %v1864_v41, %v1857_v40  ;;  %3978 = vmatpush3.bf16.msra.mxu1 %v4507_v53  ;;  %v2388_v40 = vand.u32 4294901760, %v2346_v39 }
 0x17c   : > { %3980 = vmatprep.subr.bf16.mxu1 %v4540_v36 }
 0x17d   : > { %v1866_v45 = vand.u32 4294901760, %v1865_v43  ;;  %v2488_v43 = vsub.f32 %v4499_v50, %v2370_v52 }
 0x17e   : > { %3613 = vmatmul.mubr.f32.gmra.mrb[2].mxu1 %v4429_v20 }
 0x17f   : > { %v3955_v46 = vpack.c.bf16 %v1866_v45, %v1859_v44  ;;  %3982 = vmatpush3.bf16.msra.mxu1 %v4540_v36  ;;  %v2482_v44 = vand.u32 4294901760, %v2481_v42  ;;  %v2489_v45 = vand.u32 4294901760, %v2488_v43 }
 0x180   : > { %3984 = vmatprep.subr.bf16.mxu1 %v4552_v10 }
 0x181   : > { %3956 = vmatprep.subr.bf16.mxu0 %v3955_v46 }
 0x183   : > { %3986 = vmatpush3.bf16.msra.mxu1 %v4552_v10 }
 0x24d   : > { %v3611_v55 = vpop.f32.mrb[0].mxu1 }
 0x24e   : > { %v4075_v56 = vadd.f32 %v3611_v55, %v3162_v54  ;;  %v1695_v57 = vpop.f32.mrb[1].mxu1  ;;  %v2503_v55 = vand.u32 4294901760, %v2502_v49 }
 0x24f   : > { %v4076_v58 = vadd.f32 %v3162_v54, %v1695_v57 }
 0x250   : > { %v1718_v59 = vmax.f32 %v4075_v56, 0.0 }
 0x251   : > { %v1717_v60 = vmax.f32 %v4076_v58, 0.0  ;;  %v3614_v61 = vpop.f32.mrb[2].mxu1 }
 0x252   : > { %v1739_v62 = vsel %vm1721_vm2, %v1718_v59, 0  ;;  %v4077_v63 = vadd.f32 %v3614_v61, %v3162_v54  ;;  %v1707_v1 = vpop.f32.mrb[3].mxu1  ;;  %1723 = vst.msk [vmem:[%s369_s21 + $0x8] sm:$0xff] %vm1721_vm2, %v1718_v59  ;;  %v2504_v59 = vsub.f32 %v2502_v49, %v2503_v55  ;;  %v2516_v61 = vsub.f32 %v2344_v0, %v2382_v28 }
 0x253   : > { %v1824_v2 = vand.u32 4294901760, %v1739_v62  ;;  %1722 = vst.msk [vmem:[%s369_s21] sm:$0xff] %vm1721_vm2, %v1717_v60  ;;  %v1736_v3 = vsel %vm1721_vm2, %v1717_v60, 0  ;;  %v4078_v4 = vadd.f32 %v3162_v54, %v1707_v1  ;;  %v2495_v54 = vsub.f32 %v2341_v32, %v2373_v34 }
 0x254   : > { %v1814_v6 = vand.u32 4294901760, %v1736_v3  ;;  %v1720_v7 = vmax.f32 %v4077_v63, 0.0  ;;  %v2509_v60 = vsub.f32 %v2343_v38, %v2379_v5  ;;  %v2505_v63 = vand.u32 4294901760, %v2504_v59 }
 0x255   : > { %v1825_v8 = vsub.f32 %v1739_v62, %v1824_v2  ;;  %v1719_v9 = vmax.f32 %v4078_v4, 0.0  ;;  %v2496_v52 = vand.u32 4294901760, %v2495_v54 }
 0x256   : > { %v1815_v11 = vsub.f32 %v1736_v3, %v1814_v6  ;;  %v1745_v12 = vsel %vm1721_vm2, %v1720_v7, 0  ;;  %1725 = vst.msk [vmem:[%s369_s21 + $0x18] sm:$0xff] %vm1721_vm2, %v1720_v7  ;;  %v2510_v1 = vand.u32 4294901760, %v2509_v60 }
 0x257   : > { %v1826_v13 = vand.u32 4294901760, %v1825_v8  ;;  %v1844_v14 = vand.u32 4294901760, %v1745_v12  ;;  %1724 = vst.msk [vmem:[%s369_s21 + $0x10] sm:$0xff] %vm1721_vm2, %v1719_v9  ;;  %v1742_v15 = vsel %vm1721_vm2, %v1719_v9, 0  ;;  %v4581_v57 = vpack.c.bf16 %v2503_v55, %v2496_v52 }
 0x258   : > { %v1834_v16 = vand.u32 4294901760, %v1742_v15  ;;  %v1816_v17 = vand.u32 4294901760, %v1815_v11  ;;  %v2497_v58 = vsub.f32 %v2495_v54, %v2496_v52 }
 0x259   : > { %v1827_v18 = vsub.f32 %v1825_v8, %v1826_v13  ;;  %v1845_v20 = vsub.f32 %v1745_v12, %v1844_v14 }
 0x25a   : > { %v1835_v21 = vsub.f32 %v1742_v15, %v1834_v16  ;;  %v1817_v22 = vsub.f32 %v1815_v11, %v1816_v17  ;;  %v2498_v62 = vand.u32 4294901760, %v2497_v58 }
 0x25b   : > { %v1846_v23 = vand.u32 4294901760, %v1845_v20  ;;  %v1828_v26 = vand.u32 4294901760, %v1827_v18 }
 0x25c   : > { %v1818_v24 = vand.u32 4294901760, %v1817_v22  ;;  %v1836_v25 = vand.u32 4294901760, %v1835_v21  ;;  %v4584_v3 = vpack.c.bf16 %v2505_v63, %v2498_v62 }
 0x25d   : > { %v1847_v27 = vsub.f32 %v1845_v20, %v1846_v23 }
 0x25e   : > { %3619 = vmatprep.mubr.f32.mxu0 %v1818_v24  ;;  %v1837_v29 = vsub.f32 %v1835_v21, %v1836_v25  ;;  %v4596_v24 = vpack.c.bf16 %v2502_v49, %v2495_v54 }
 0x25f   : > { %3620 = vmatmul.mubr.f32.vlgmr.msra.gmra.mrb[4].mxu0 %v1828_v26  ;;  %v1848_v31 = vand.u32 4294901760, %v1847_v27  ;;  %v3163_v27 = vld [vmem:[%s4681_s6] ss:$0 sm:$0xff] }
 0x260   : > { %3958 = vmatpush3.bf16.msra.mxu0 %v3955_v46  ;;  %v1838_v30 = vand.u32 4294901760, %v1837_v29  ;;  %v4576_v46 = vpack.c.bf16 %v2489_v45, %v2482_v44 }
 0x261   : > { %3960 = vmatprep.subr.bf16.mxu0 %v3959_v47 }
 0x262   : > { %3622 = vmatprep.mubr.f32.mxu0 %v1838_v30 }
 0x263   : > { %3623 = vmatmul.mubr.f32.gmra.mrb[6].mxu0 %v1848_v31 }
 0x264   : > { %3629 = vmatprep.mubr.f32.mxu0 %v1814_v6 }
 0x267   : > { %3630 = vmatmul.mubr.f32.vlgmr.msra.gmra.mrb[4].mxu0 %v1824_v2 }
 0x268   : > { %3962 = vmatpush3.bf16.msra.mxu0 %v3959_v47  ;;  %3632 = vmatprep.mubr.f32.mxu0 %v1834_v16  ;;  %v2483_v47 = vsub.f32 %v2481_v42, %v2482_v44 }
 0x269   : > { %3964 = vmatprep.subr.bf16.mxu0 %v4485_v37 }
 0x26a   : > { %v2484_v51 = vand.u32 4294901760, %v2483_v47 }
 0x26b   : > { %3633 = vmatmul.mubr.f32.gmra.mrb[6].mxu0 %v1844_v14 }
 0x26c   : > { %3639 = vmatprep.mubr.f32.mxu0 %v1815_v11 }
 0x26f   : > { %3640 = vmatmul.mubr.f32.vlgmr.msra.gmra.mrb[4].mxu0 %v1825_v8  ;;  %v2511_v8 = vsub.f32 %v2509_v60, %v2510_v1 }
 0x270   : > { %3966 = vmatpush3.bf16.msra.mxu0 %v4485_v37  ;;  %3642 = vmatprep.mubr.f32.mxu0 %v1835_v21 }
 0x271   : > { %3968 = vmatprep.subr.bf16.mxu0 %v4489_v48 }
 0x273   : > { %3643 = vmatmul.mubr.f32.gmra.mrb[6].mxu0 %v1845_v20 }
 0x274   : > { %3649 = vmatprep.mubr.f32.mxu0 %v1816_v17 }
 0x277   : > { %3650 = vmatmul.mubr.f32.vlgmr.msra.gmra.mrb[4].mxu0 %v1826_v13  ;;  %v2512_v13 = vand.u32 4294901760, %v2511_v8 }
 0x278   : > { %3970 = vmatpush3.bf16.msra.mxu0 %v4489_v48  ;;  %3652 = vmatprep.mubr.f32.mxu0 %v1836_v25  ;;  %v2490_v48 = vsub.f32 %v2488_v43, %v2489_v45  ;;  %v4598_v25 = vpack.c.bf16 %v2516_v61, %v2509_v60 }
 0x279   : > { %3972 = vmatprep.subr.bf16.mxu0 %v4485_v37 }
 0x27a   : > { %v2491_v50 = vand.u32 4294901760, %v2490_v48 }
 0x27b   : > { %3653 = vmatmul.mubr.f32.gmra.mrb[6].mxu0 %v1846_v23  ;;  %v4594_v23 = vpack.c.bf16 %v2488_v43, %v2481_v42 }
 0x27c   : > { %3659 = vmatprep.mubr.f32.mxu0 %v1814_v6  ;;  %v4579_v56 = vpack.c.bf16 %v2491_v50, %v2484_v51 }
 0x27f   : > { %3660 = vmatmul.mubr.f32.vlgmr.msra.gmra.mrb[4].mxu0 %v1824_v2 }
 0x280   : > { %3974 = vmatpush3.bf16.msra.mxu0 %v4485_v37  ;;  %3662 = vmatprep.mubr.f32.mxu0 %v1834_v16  ;;  %v2345_v37 = vld [vmem:[%s4682_s7 + $0x30] sm:$0xff] }
 0x281   : > { %4024 = vmatprep.subr.bf16.mxu0 %v4507_v53  ;;  %v2385_v19 = vand.u32 4294901760, %v2345_v37 }
 0x283   : > { %3663 = vmatmul.mubr.f32.gmra.mrb[6].mxu0 %v1844_v14  ;;  %v4564_v41 = vpack.c.bf16 %v2388_v40, %v2385_v19  ;;  %v2523_v4 = vsub.f32 %v2345_v37, %v2385_v19 }
 0x284   : > { %3669 = vmatprep.mubr.f32.mxu0 %v1814_v6  ;;  %v2530_v6 = vsub.f32 %v2346_v39, %v2388_v40 }
 0x285   : > { %3988 = vmatprep.subr.bf16.mxu1 %v4564_v41  ;;  %v2524_v11 = vand.u32 4294901760, %v2523_v4 }
 0x286   : > { %3990 = vmatpush3.bf16.msra.mxu1 %v4564_v41  ;;  %v2531_v12 = vand.u32 4294901760, %v2530_v6  ;;  %v4600_v26 = vpack.c.bf16 %v2530_v6, %v2523_v4 }
 0x287   : > { %3670 = vmatmul.mubr.f32.vlgmr.msra.gmra.mrb[4].mxu0 %v1824_v2  ;;  %3992 = vmatprep.subr.bf16.mxu1 %v4579_v56  ;;  %v2517_v2 = vand.u32 4294901760, %v2516_v61 }
 0x288   : > { %3672 = vmatprep.mubr.f32.mxu0 %v1834_v16  ;;  %4026 = vmatpush3.bf16.msra.mxu0 %v4507_v53  ;;  %v4588_v15 = vpack.c.bf16 %v2531_v12, %v2524_v11  ;;  %v2525_v16 = vsub.f32 %v2523_v4, %v2524_v11  ;;  %v2532_v17 = vsub.f32 %v2530_v6, %v2531_v12 }
 0x289   : > { %4028 = vmatprep.subr.bf16.mxu0 %v4540_v36  ;;  %v4586_v7 = vpack.c.bf16 %v2517_v2, %v2510_v1  ;;  %v2518_v9 = vsub.f32 %v2516_v61, %v2517_v2 }
 0x28a   : > { %v2526_v20 = vand.u32 4294901760, %v2525_v16  ;;  %v2533_v21 = vand.u32 4294901760, %v2532_v17 }
 0x28b   : > { %3673 = vmatmul.mubr.f32.gmra.mrb[6].mxu0 %v1844_v14  ;;  %v2519_v14 = vand.u32 4294901760, %v2518_v9 }
 0x28c   : > { %4030 = vmatpush3.bf16.msra.mxu0 %v4540_v36  ;;  %v4592_v22 = vpack.c.bf16 %v2533_v21, %v2526_v20 }
 0x28d   : > { %4032 = vmatprep.subr.bf16.mxu0 %v4552_v10  ;;  %v4590_v18 = vpack.c.bf16 %v2519_v14, %v2512_v13 }
 0x290   : > { %4034 = vmatpush3.bf16.msra.mxu0 %v4552_v10 }
 0x291   : > { %4036 = vmatprep.subr.bf16.mxu0 %v4564_v41 }
 0x294   : > { %4038 = vmatpush3.bf16.msra.mxu0 %v4564_v41 }
 0x295   : > { %4040 = vmatprep.subr.bf16.mxu0 %v4576_v46 }
 0x35a   : > { %v3671_v29 = vpop.f32.mrb[4].mxu0 }
 0x35b   : > { %v4079_v30 = vadd.f32 %v3671_v29, %v3163_v27  ;;  %v2313_v31 = vpop.f32.mrb[5].mxu0 }
 0x35c   : > { %v4080_v32 = vadd.f32 %v3163_v27, %v2313_v31 }
 0x35d   : > { %v2336_v33 = vmax.f32 %v4079_v30, 0.0 }
 0x35e   : > { %v2335_v34 = vmax.f32 %v4080_v32, 0.0  ;;  %v3674_v35 = vpop.f32.mrb[6].mxu0 }
 0x35f   : > { %v2358_v38 = vsel %vm1038_vm1, %v2336_v33, 0  ;;  %v4081_v0 = vadd.f32 %v3674_v35, %v3163_v27  ;;  %v2325_v5 = vpop.f32.mrb[7].mxu0 }
 0x360   : > { %v4606_v28 = vand.u32 4294901760, %v2358_v38  ;;  %v2355_v37 = vsel %vm1038_vm1, %v2335_v34, 0  ;;  %v4082_v39 = vadd.f32 %v3163_v27, %v2325_v5 }
 0x361   : > { %v2439_v19 = vand.u32 4294901760, %v2355_v37  ;;  %v2338_v40 = vmax.f32 %v4081_v0, 0.0 }
 0x362   : > { %v4610_v42 = vsub.f32 %v2358_v38, %v4606_v28  ;;  %v2337_v43 = vmax.f32 %v4082_v39, 0.0 }
 0x363   : > { %v2440_v44 = vsub.f32 %v2355_v37, %v2439_v19  ;;  %v2364_v45 = vsel %vm1038_vm1, %v2338_v40, 0 }
 0x364   : > { %v2451_v47 = vand.u32 4294901760, %v4610_v42  ;;  %v4614_v48 = vand.u32 4294901760, %v2364_v45  ;;  %v2361_v54 = vsel %vm1038_vm1, %v2337_v43, 0 }
 0x365   : > { %v2459_v49 = vand.u32 4294901760, %v2361_v54  ;;  %v2441_v51 = vand.u32 4294901760, %v2440_v44 }
 0x366   : > { %v2452_v50 = vsub.f32 %v4610_v42, %v2451_v47  ;;  %v4619_v52 = vsub.f32 %v2364_v45, %v4614_v48 }
 0x367   : > { %v2460_v55 = vsub.f32 %v2361_v54, %v2459_v49  ;;  %3757 = vmatprep.mubr.f32.mxu0 %v2441_v51  ;;  %v2442_v58 = vsub.f32 %v2440_v44, %v2441_v51 }
 0x368   : > { %3758 = vmatmul.mubr.f32.vlgmr.msra.gmra.mrb[8].mxu0 %v2451_v47  ;;  %v2471_v59 = vand.u32 4294901760, %v4619_v52  ;;  %v2453_v62 = vand.u32 4294901760, %v2452_v50 }
 0x369   : > { %4042 = vmatpush3.bf16.msra.mxu0 %v4576_v46  ;;  %v2443_v60 = vand.u32 4294901760, %v2442_v58  ;;  %v2461_v61 = vand.u32 4294901760, %v2460_v55 }
 0x36a   : > { %4044 = vmatprep.subr.bf16.mxu0 %v4581_v57  ;;  %v2472_v63 = vsub.f32 %v4619_v52, %v2471_v59 }
 0x36b   : > { %3691 = vmatprep.mubr.f32.mxu1 %v2443_v60  ;;  %3760 = vmatprep.mubr.f32.mxu0 %v2461_v61  ;;  %v2462_v1 = vsub.f32 %v2460_v55, %v2461_v61 }
 0x36c   : > { %3692 = vmatmul.mubr.f32.vlgmr.msra.gmra.mrb[4].mxu1 %v2453_v62  ;;  %3761 = vmatmul.mubr.f32.gmra.mrb[10].mxu0 %v2471_v59  ;;  %v2473_v46 = vand.u32 4294901760, %v2472_v63 }
 0x36d   : > { %3994 = vmatpush3.bf16.msra.mxu1 %v4579_v56  ;;  %4046 = vmatpush3.bf16.msra.mxu0 %v4581_v57  ;;  %v2463_v2 = vand.u32 4294901760, %v2462_v1 }
 0x36e   : > { %3779 = vmatprep.mubr.f32.mxu0 %v2439_v19  ;;  %3996 = vmatprep.subr.bf16.mxu1 %v4584_v3 }
 0x36f   : > { %3694 = vmatprep.mubr.f32.mxu1 %v2463_v2  ;;  %4048 = vmatprep.subr.bf16.mxu0 %v4586_v7 }
 0x370   : > { %3695 = vmatmul.mubr.f32.gmra.mrb[6].mxu1 %v2473_v46 }
 0x371   : > { %3998 = vmatpush3.bf16.msra.mxu1 %v4584_v3  ;;  %4050 = vmatpush3.bf16.msra.mxu0 %v4586_v7 }
 0x372   : > { %3713 = vmatprep.mubr.f32.mxu1 %v2439_v19  ;;  %4000 = vmatprep.subr.bf16.mxu1 %v4590_v18 }
 0x373   : > { %4052 = vmatprep.subr.bf16.mxu0 %v4588_v15 }
 0x375   : > { %4002 = vmatpush3.bf16.msra.mxu1 %v4590_v18  ;;  %4054 = vmatpush3.bf16.msra.mxu0 %v4588_v15 }
 0x376   : > { %4004 = vmatprep.subr.bf16.mxu1 %v4592_v22  ;;  %4056 = vmatprep.subr.bf16.mxu0 %v4507_v53 }
 0x378   : > { %3780 = vmatmul.mubr.f32.vlgmr.msra.gmra.mrb[8].mxu0 %v4606_v28 }
 0x379   : > { %4006 = vmatpush3.bf16.msra.mxu1 %v4592_v22  ;;  %3782 = vmatprep.mubr.f32.mxu0 %v2459_v49 }
 0x37a   : > { %4058 = vmatpush3.bf16.msra.mxu0 %v4507_v53  ;;  %4008 = vmatprep.subr.bf16.mxu1 %v4594_v23 }
 0x37b   : > { %4060 = vmatprep.subr.bf16.mxu0 %v4540_v36 }
 0x37c   : > { %3714 = vmatmul.mubr.f32.vlgmr.msra.gmra.mrb[4].mxu1 %v4606_v28  ;;  %3783 = vmatmul.mubr.f32.gmra.mrb[10].mxu0 %v4614_v48 }
 0x37d   : > { %3716 = vmatprep.mubr.f32.mxu1 %v2459_v49  ;;  %4010 = vmatpush3.bf16.msra.mxu1 %v4594_v23 }
 0x37e   : > { %4062 = vmatpush3.bf16.msra.mxu0 %v4540_v36  ;;  %3801 = vmatprep.mubr.f32.mxu0 %v2439_v19 }
 0x37f   : > { %4012 = vmatprep.subr.bf16.mxu1 %v4596_v24  ;;  %4064 = vmatprep.subr.bf16.mxu0 %v4552_v10 }
 0x380   : > { %3717 = vmatmul.mubr.f32.gmra.mrb[6].mxu1 %v4614_v48 }
 0x381   : > { %4014 = vmatpush3.bf16.msra.mxu1 %v4596_v24  ;;  %3735 = vmatprep.mubr.f32.mxu1 %v2440_v44 }
 0x382   : > { %4066 = vmatpush3.bf16.msra.mxu0 %v4552_v10  ;;  %4016 = vmatprep.subr.bf16.mxu1 %v4598_v25  ;;  %v3164_v10 = vld [vmem:[%s4683_s8] ss:$0 sm:$0xff] }
 0x383   : > { %4068 = vmatprep.subr.bf16.mxu0 %v4564_v41 }
 0x385   : > { %4018 = vmatpush3.bf16.msra.mxu1 %v4598_v25 }
 0x386   : > { %4070 = vmatpush3.bf16.msra.mxu0 %v4564_v41  ;;  %4020 = vmatprep.subr.bf16.mxu1 %v4600_v26 }
 0x389   : > { %3802 = vmatmul.mubr.f32.vlgmr.msra.gmra.mrb[8].mxu0 %v4606_v28  ;;  %4022 = vmatpush3.bf16.msra.mxu1 %v4600_v26 }
 0x38a   : > { %3804 = vmatprep.mubr.f32.mxu0 %v2459_v49 }
 0x38c   : > { %3736 = vmatmul.mubr.f32.vlgmr.msra.gmra.mrb[4].mxu1 %v4610_v42 }
 0x38d   : > { %3805 = vmatmul.mubr.f32.gmra.mrb[10].mxu0 %v4614_v48  ;;  %3738 = vmatprep.mubr.f32.mxu1 %v2460_v55 }
 0x390   : > { %3739 = vmatmul.mubr.f32.gmra.mrb[6].mxu1 %v4619_v52 }
 0x45c   : > { %v3803_v53 = vpop.f32.mrb[8].mxu0 }
 0x45d   : > { %v3010_v36 = vpop.f32.mrb[9].mxu0 }
 0x45f   : > { %v3737_v41 = vpop.f32.mrb[4].mxu1 }
 0x460   : > { %v4083_v56 = vadd.f32 %v3737_v41, %v3164_v10  ;;  %v3806_v57 = vpop.f32.mrb[10].mxu0  ;;  %v2692_v3 = vpop.f32.mrb[5].mxu1 }
 0x461   : > { %v4085_v4 = vadd.f32 %v3164_v10, %v2692_v3  ;;  %v3022_v6 = vpop.f32.mrb[11].mxu0 }
 0x462   : > { %v4084_v7 = vadd.f32 %v4083_v56, %v3803_v53 }
 0x463   : > { %v4086_v8 = vadd.f32 %v4085_v4, %v3010_v36  ;;  %v3740_v9 = vpop.f32.mrb[6].mxu1 }
 0x464   : > { %v3166_v11 = vmul.f32 -1.442695, %v4084_v7  ;;  %v4087_v12 = vadd.f32 %v3740_v9, %v3164_v10  ;;  %v2706_v13 = vpop.f32.mrb[7].mxu1 }
 0x465   : > { %v3165_v14 = vmul.f32 -1.442695, %v4086_v8  ;;  %v4089_v15 = vadd.f32 %v3164_v10, %v2706_v13 }
 0x466   : > { %4175 = vpow2.f32 %v3166_v11  ;;  %v4088_v16 = vadd.f32 %v4087_v12, %v3806_v57 }
 0x467   : > { %4177 = vpow2.f32 %v3165_v14  ;;  %v4090_v17 = vadd.f32 %v4089_v15, %v3022_v6 }
 0x468   : > { %v3168_v18 = vmul.f32 -1.442695, %v4088_v16 }
 0x469   : > { %v3167_v20 = vmul.f32 -1.442695, %v4090_v17 }
 0x46a   : > { %4179 = vpow2.f32 %v3168_v18 }
 0x46b   : > { %4181 = vpow2.f32 %v3167_v20 }
 0x470   : > { %v4176_v21 = vpop.eup %4175 }
 0x471   : > { %v4178_v22 = vpop.eup %4177  ;;  %v3045_v23 = vadd.f32 1.0, %v4176_v21 }
 0x472   : > { %v3044_v24 = vadd.f32 1.0, %v4178_v22 }
 0x474   : > { %v4180_v25 = vpop.eup %4179  ;;  %4183 = vrcp.f32 %v3044_v24 }
 0x475   : > { %v4182_v26 = vpop.eup %4181  ;;  %4185 = vrcp.f32 %v3045_v23  ;;  %v3047_v27 = vadd.f32 1.0, %v4180_v25 }
 0x476   : > { %v3046_v29 = vadd.f32 1.0, %v4182_v26 }
 0x478   : > { %4187 = vrcp.f32 %v3046_v29 }
 0x479   : > { %4189 = vrcp.f32 %v3047_v27 }
 0x47e   : > { %v4184_v30 = vpop.eup %4183 }
 0x47f   : > { %v4186_v31 = vpop.eup %4185  ;;  %3056 = vst.msk [vmem:[%s375_s22] sm:$0xff] %vm392_vm0, %v4184_v30 }
 0x480   : > { %3057 = vst.msk [vmem:[%s375_s22 + $0x8] sm:$0xff] %vm392_vm0, %v4186_v31 }
 0x482   : > { %v4188_v32 = vpop.eup %4187 }
 0x483   : > { %v4190_v33 = vpop.eup %4189  ;;  %3058 = vst.msk [vmem:[%s375_s22 + $0x10] sm:$0xff] %vm392_vm0, %v4188_v32 }
 0x484   : > { %3059 = vst.msk [vmem:[%s375_s22 + $0x18] sm:$0xff] %vm392_vm0, %v4190_v33 }
 0x485 PF: > { %s21_s13 = sadd.s32 1, %s4197_s13  }
 0x486   : > { %p18_p4 = scmp.ge.s32.totalorder %s21_s13, 4  }
 0x488   :  { %20 = sbr.rel (!%p18_p4) target bundleno = 1 (0x1), region = 98 }

</bundles_post_ra>
